<compile_context>
chip_gen: v7x
topology: tpu7x:2x2x1
jax: 0.10.0
libtpu: 0.0.40
codegen_flags: <defaults>
</compile_context>

<pallas_src>
import jax
import jax.numpy as jnp
import numpy as np
from jax.experimental import pallas as pl
from jax.experimental.pallas import tpu as pltpu


# ----------------------------- Pallas kernel --------------------------------
def ncf_kernel(xT_ref, yT_ref, mT_ref,
               w1_ref, b1_ref, w2_ref, b2_ref, wo_ref, bo_ref,
               prob_ref, loss_ref):
    xb = xT_ref[...]                                   # (F, tm) bf16
    x32 = xb.astype(jnp.float32)

    # self.layers: Linear -> ReLU -> (Dropout=id) -> Linear -> ReLU -> (Dropout=id)
    # transposed form: h^T = W @ x^T + b_col   (MXU in bf16, f32 accumulation)
    h = jnp.dot(w1_ref[...], xb, preferred_element_type=jnp.float32) + b1_ref[...]
    h = jnp.maximum(h, 0.0)
    h = jnp.dot(w2_ref[...], h.astype(jnp.bfloat16),
                preferred_element_type=jnp.float32) + b2_ref[...]
    h = jnp.maximum(h, 0.0)

    # residual + output projection: width-1 matmul -> VPU mul + sublane reduce
    z = h + x32                                        # (F, tm) f32
    logit = jnp.sum(z * wo_ref[...], axis=0, keepdims=True) + bo_ref[0, 0]  # (1, tm)

    y = yT_ref[...]                                    # (1, tm)
    m = mT_ref[...]                                    # (1, tm)

    # BCEWithLogitsLoss(reduction='none') — stable form, shared exp(-|x|) for
    # both the log1p term and the sigmoid.
    e = jnp.exp(-jnp.abs(logit))
    bce = jnp.maximum(logit, 0.0) - logit * y + jnp.log1p(e)
    loss_ref[...] = bce * m                            # masked per-element loss

    inv = 1.0 / (1.0 + e)
    prob_ref[...] = jnp.where(logit >= 0.0, inv, e * inv)   # sigmoid(logit)


def ncf_forward_pallas(xT, yT, mT, params, *, tm=128):
    """xT: [F_pad, N_pad] bf16 (feature-major); yT/mT: [1, N_pad] f32."""
    F, Np = xT.shape
    assert Np % tm == 0
    W1, b1, W2, b2, wo, bo = params

    full = lambda i: (0, 0)
    col = lambda i: (0, i)

    prob, loss = pl.pallas_call(
        ncf_kernel,
        out_shape=(jax.ShapeDtypeStruct((1, Np), jnp.float32),
                   jax.ShapeDtypeStruct((1, Np), jnp.float32)),
        grid_spec=pltpu.PrefetchScalarGridSpec(
            num_scalar_prefetch=0,
            grid=(Np // tm,),
            in_specs=[
                pl.BlockSpec((F, tm), col),        # x^T (bf16)
                pl.BlockSpec((1, tm), col),        # labels (lane-dense)
                pl.BlockSpec((1, tm), col),        # mask (lane-dense)
                pl.BlockSpec((F, F), full),        # W1 (bf16)
                pl.BlockSpec((F, 1), full),        # b1 column
                pl.BlockSpec((F, F), full),        # W2 (bf16)
                pl.BlockSpec((F, 1), full),        # b2 column
                pl.BlockSpec((F, 1), full),        # W_out column
                pl.BlockSpec(memory_space=pltpu.MemorySpace.SMEM),   # b_out scalar
            ],
            out_specs=[
                pl.BlockSpec((1, tm), col),        # sigmoid probs (lane-dense)
                pl.BlockSpec((1, tm), col),        # masked BCE loss (lane-dense)
            ],
        ),
        compiler_params=pltpu.CompilerParams(dimension_semantics=("parallel",)),
    )(xT, yT, mT, W1, b1, W2, b2, wo, bo)
    return prob, loss


# ------------------------------ helpers --------------------------------------
def xavier_uniform(key, shape):
    fan_in, fan_out = shape[0], shape[1]
    limit = np.sqrt(6.0 / (fan_in + fan_out))
    return jax.random.uniform(key, shape, jnp.float32, -limit, limit)


def pad_to(x, shape):
    pads = [(0, s - d) for d, s in zip(x.shape, shape)]
    return jnp.pad(x, pads)


# ----------------------------------- main ------------------------------------
if __name__ == "__main__":
    # Small-shape config (n_quiz=0, n_group=0, is_dash=False, task='1')
    n_question, n_subject, n_user = 50, 20, 10
    q_dim = u_dim = 32
    in_feature = 2 * q_dim + u_dim          # 96
    F_pad = 128                             # pad features to a full lane width
    seq_len, batch_size, n_subj_per_q = 8, 4, 4
    N = seq_len * batch_size
    TM = 128                                # examples per grid step (lane tile)

    key = jax.random.PRNGKey(0)
    ks = jax.random.split(key, 20)

    # Embedding tables (nn.Embedding default ~ N(0,1))
    q_emb = jax.random.normal(ks[0], (n_question, q_dim), jnp.float32)
    s_emb = jax.random.normal(ks[1], (n_subject, q_dim), jnp.float32)
    u_emb = jax.random.normal(ks[2], (n_user, u_dim), jnp.float32)

    # Linear params in PyTorch (out_features, in_features) layout; used directly
    # by the feature-major kernel as h^T = W @ x^T + b_col.
    W1 = xavier_uniform(ks[3], (in_feature, in_feature))
    W2 = xavier_uniform(ks[4], (in_feature, in_feature))
    Wo = xavier_uniform(ks[5], (1, in_feature))
    b1 = jax.random.uniform(ks[14], (in_feature,), jnp.float32, -0.05, 0.05)
    b2 = jax.random.uniform(ks[15], (in_feature,), jnp.float32, -0.05, 0.05)
    bo = jax.random.uniform(ks[16], (1,), jnp.float32, -0.05, 0.05)

    # Synthetic batch
    user_ids = jax.random.randint(ks[6], (batch_size,), 0, n_user)
    q_ids = jax.random.randint(ks[7], (seq_len, batch_size), 0, n_question)
    subject_ids = jax.random.randint(ks[8], (seq_len, batch_size, n_subj_per_q), 0, n_subject)
    subject_mask = (jax.random.uniform(ks[9], (seq_len, batch_size, n_subj_per_q)) > 0.3).astype(jnp.float32)
    labels = (jax.random.uniform(ks[10], (seq_len, batch_size)) > 0.5).astype(jnp.float32)
    test_mask = (jax.random.uniform(ks[11], (seq_len, batch_size)) > 0.2).astype(jnp.float32)
    valid_mask = (jax.random.uniform(ks[12], (seq_len, batch_size)) > 0.2).astype(jnp.float32)
    local_test_mask = (jax.random.uniform(ks[13], (seq_len, batch_size)) > 0.2).astype(jnp.float32)

    # ---- glue: embedding lookups / subject masked-sum / concat (plain JAX) ----
    # TODO(synk): fuse the embedding gathers + concat into the kernel (scalar-
    # prefetch id tables, or split W1 into per-source row blocks) to remove this
    # HBM round-trip of x; kept in JAX here.
    users = jnp.broadcast_to(u_emb[user_ids][None, :, :], (seq_len, batch_size, u_dim))
    questions = q_emb[q_ids]                                                  # [S, B, q_dim]
    subjects = jnp.sum(s_emb[subject_ids] * subject_mask[..., None], axis=2)  # [S, B, q_dim]
    input_embeddings = jnp.concatenate([questions, subjects, users], axis=-1) # [S, B, 96]
    mask = test_mask * valid_mask * local_test_mask                           # [S, B]

    # ---- pad + transpose to the kernel's feature-major, lane-dense layout ----
    N_pad = max(2 * TM, ((N + TM - 1) // TM) * TM)       # >=2 parallel grid steps
    x_flat = input_embeddings.reshape(N, in_feature)
    xT = pad_to(x_flat, (N_pad, F_pad)).T.astype(jnp.bfloat16)   # (F_pad, N_pad)
    yT = pad_to(labels.reshape(1, N), (1, N_pad))                # (1, N_pad)
    mT = pad_to(mask.reshape(1, N), (1, N_pad))                  # padded mask = 0

    W1_k = pad_to(W1, (F_pad, F_pad)).astype(jnp.bfloat16)
    W2_k = pad_to(W2, (F_pad, F_pad)).astype(jnp.bfloat16)
    b1_k = pad_to(b1.reshape(in_feature, 1), (F_pad, 1))
    b2_k = pad_to(b2.reshape(in_feature, 1), (F_pad, 1))
    wo_k = pad_to(Wo.reshape(in_feature, 1), (F_pad, 1))
    bo_k = bo.reshape(1, 1)
    params = (W1_k, b1_k, W2_k, b2_k, wo_k, bo_k)

    # ---- Pallas hot path ----
    prob_row, masked_loss_row = ncf_forward_pallas(xT, yT, mT, params, tm=TM)
    jax.block_until_ready((prob_row, masked_loss_row))

    probs = prob_row[0, :N].reshape(seq_len, batch_size)
    # loss.mean() / mask.float().mean()   (padded entries have mask = 0)
    loss = (jnp.sum(masked_loss_row[0, :N]) / N) / jnp.mean(mask)
    jax.block_until_ready((loss, probs))

    # ---- pure-JAX reference (mirrors the bf16 MXU path of the kernel) ----
    def ref_forward(xT_bf16):
        x32 = xT_bf16.astype(jnp.float32)
        h = jnp.maximum(jnp.dot(W1_k, xT_bf16, preferred_element_type=jnp.float32) + b1_k, 0.0)
        h = jnp.maximum(jnp.dot(W2_k, h.astype(jnp.bfloat16),
                                preferred_element_type=jnp.float32) + b2_k, 0.0)
        z = h + x32
        logit = jnp.sum(z * wo_k, axis=0, keepdims=True) + bo_k[0, 0]
        bce = jnp.maximum(logit, 0.0) - logit * yT + jnp.log1p(jnp.exp(-jnp.abs(logit)))
        return jax.nn.sigmoid(logit), bce * mT

    ref_prob, ref_loss = ref_forward(xT)
    np.testing.assert_allclose(np.asarray(prob_row), np.asarray(ref_prob), atol=2e-3, rtol=2e-3)
    np.testing.assert_allclose(np.asarray(masked_loss_row), np.asarray(ref_loss), atol=2e-3, rtol=2e-3)

    print("KERNEL_OK")
</pallas_src>

<mosaic_0001>
module attributes {stable_mosaic.version = 11 : i64} {
  func.func @ncf_kernel(%arg0: i32, %arg1: memref<128x128xbf16, #tpu.memory_space<vmem>>, %arg2: memref<1x128xf32, #tpu.memory_space<vmem>>, %arg3: memref<1x128xf32, #tpu.memory_space<vmem>>, %arg4: memref<128x128xbf16, #tpu.memory_space<vmem>>, %arg5: memref<128x1xf32, #tpu.memory_space<vmem>>, %arg6: memref<128x128xbf16, #tpu.memory_space<vmem>>, %arg7: memref<128x1xf32, #tpu.memory_space<vmem>>, %arg8: memref<128x1xf32, #tpu.memory_space<vmem>>, %arg9: memref<1x1xf32, #tpu.memory_space<smem>>, %arg10: memref<1x128xf32, #tpu.memory_space<vmem>>, %arg11: memref<1x128xf32, #tpu.memory_space<vmem>>) attributes {dimension_semantics = [#tpu.dimension_semantics<parallel>], iteration_bounds = array<i64: 2>, scalar_prefetch = 0 : i64, scratch_operands = 0 : i64, tpu.core_type = #tpu.core_type<tc>, window_params = [{transform_indices = @transform_0, window_bounds = array<i64: 128, 128>}, {transform_indices = @transform_1, window_bounds = array<i64: 1, 128>}, {transform_indices = @transform_2, window_bounds = array<i64: 1, 128>}, {pipeline_mode = #tpu.pipeline_mode<synchronous>, transform_indices = @transform_3, window_bounds = array<i64: 128, 128>}, {pipeline_mode = #tpu.pipeline_mode<synchronous>, transform_indices = @transform_4, window_bounds = array<i64: 128, 1>}, {pipeline_mode = #tpu.pipeline_mode<synchronous>, transform_indices = @transform_5, window_bounds = array<i64: 128, 128>}, {pipeline_mode = #tpu.pipeline_mode<synchronous>, transform_indices = @transform_6, window_bounds = array<i64: 128, 1>}, {pipeline_mode = #tpu.pipeline_mode<synchronous>, transform_indices = @transform_7, window_bounds = array<i64: 128, 1>}, {transform_indices = @transform_8, window_bounds = array<i64: 1, 1>}, {transform_indices = @transform_9, window_bounds = array<i64: 1, 128>}, {transform_indices = @transform_10, window_bounds = array<i64: 1, 128>}]} {
    %c0 = arith.constant 0 : index
    %c0_0 = arith.constant 0 : index
    %0 = vector.load %arg1[%c0, %c0_0] : memref<128x128xbf16, #tpu.memory_space<vmem>>, vector<128x128xbf16>
    %1 = arith.extf %0 : vector<128x128xbf16> to vector<128x128xf32>
    %c0_1 = arith.constant 0 : index
    %c0_2 = arith.constant 0 : index
    %2 = vector.load %arg4[%c0_1, %c0_2] : memref<128x128xbf16, #tpu.memory_space<vmem>>, vector<128x128xbf16>
    %cst = arith.constant dense<0.000000e+00> : vector<128x128xf32>
    %3 = tpu.matmul %2, %0, %cst {dimension_numbers = #tpu.dot_dimension_numbers<[1], [0], [0], [1], [0, 0, 1, 1], [], []>} : vector<128x128xbf16>, vector<128x128xbf16>, vector<128x128xf32> -> vector<128x128xf32>
    %c0_3 = arith.constant 0 : index
    %c0_4 = arith.constant 0 : index
    %4 = vector.load %arg5[%c0_3, %c0_4] : memref<128x1xf32, #tpu.memory_space<vmem>>, vector<128x1xf32>
    %5 = vector.broadcast %4 : vector<128x1xf32> to vector<128x128xf32>
    %6 = arith.addf %3, %5 : vector<128x128xf32>
    %cst_5 = arith.constant 0.000000e+00 : f32
    %7 = vector.broadcast %cst_5 : f32 to vector<128x128xf32>
    %8 = arith.maximumf %6, %7 : vector<128x128xf32>
    %c0_6 = arith.constant 0 : index
    %c0_7 = arith.constant 0 : index
    %9 = vector.load %arg6[%c0_6, %c0_7] : memref<128x128xbf16, #tpu.memory_space<vmem>>, vector<128x128xbf16>
    %10 = arith.truncf %8 : vector<128x128xf32> to vector<128x128xbf16>
    %cst_8 = arith.constant dense<0.000000e+00> : vector<128x128xf32>
    %11 = tpu.matmul %9, %10, %cst_8 {dimension_numbers = #tpu.dot_dimension_numbers<[1], [0], [0], [1], [0, 0, 1, 1], [], []>} : vector<128x128xbf16>, vector<128x128xbf16>, vector<128x128xf32> -> vector<128x128xf32>
    %c0_9 = arith.constant 0 : index
    %c0_10 = arith.constant 0 : index
    %12 = vector.load %arg7[%c0_9, %c0_10] : memref<128x1xf32, #tpu.memory_space<vmem>>, vector<128x1xf32>
    %13 = vector.broadcast %12 : vector<128x1xf32> to vector<128x128xf32>
    %14 = arith.addf %11, %13 : vector<128x128xf32>
    %cst_11 = arith.constant 0.000000e+00 : f32
    %15 = vector.broadcast %cst_11 : f32 to vector<128x128xf32>
    %16 = arith.maximumf %14, %15 : vector<128x128xf32>
    %17 = arith.addf %16, %1 : vector<128x128xf32>
    %c0_12 = arith.constant 0 : index
    %c0_13 = arith.constant 0 : index
    %18 = vector.load %arg8[%c0_12, %c0_13] : memref<128x1xf32, #tpu.memory_space<vmem>>, vector<128x1xf32>
    %19 = vector.broadcast %18 : vector<128x1xf32> to vector<128x128xf32>
    %20 = arith.mulf %17, %19 : vector<128x128xf32>
    %cst_14 = arith.constant dense<0.000000e+00> : vector<128xf32>
    %21 = vector.multi_reduction <add>, %20, %cst_14 [0] : vector<128x128xf32> to vector<128xf32>
    %22 = vector.shape_cast %21 : vector<128xf32> to vector<1x128xf32>
    %c0_15 = arith.constant 0 : index
    %c0_16 = arith.constant 0 : index
    %23 = memref.load %arg9[%c0_15, %c0_16] : memref<1x1xf32, #tpu.memory_space<smem>>
    %24 = vector.broadcast %23 : f32 to vector<1x128xf32>
    %25 = arith.addf %22, %24 : vector<1x128xf32>
    %c0_17 = arith.constant 0 : index
    %c0_18 = arith.constant 0 : index
    %26 = vector.load %arg2[%c0_17, %c0_18] : memref<1x128xf32, #tpu.memory_space<vmem>>, vector<1x128xf32>
    %c0_19 = arith.constant 0 : index
    %c0_20 = arith.constant 0 : index
    %27 = vector.load %arg3[%c0_19, %c0_20] : memref<1x128xf32, #tpu.memory_space<vmem>>, vector<1x128xf32>
    %28 = math.absf %25 : vector<1x128xf32>
    %cst_21 = arith.constant 0.000000e+00 : f32
    %29 = vector.broadcast %cst_21 : f32 to vector<1x128xf32>
    %30 = arith.subf %29, %28 : vector<1x128xf32>
    %31 = math.exp %30 : vector<1x128xf32>
    %cst_22 = arith.constant 0.000000e+00 : f32
    %32 = vector.broadcast %cst_22 : f32 to vector<1x128xf32>
    %33 = arith.maximumf %25, %32 : vector<1x128xf32>
    %34 = arith.mulf %25, %26 : vector<1x128xf32>
    %35 = arith.subf %33, %34 : vector<1x128xf32>
    %36 = math.log1p %31 : vector<1x128xf32>
    %37 = arith.addf %35, %36 : vector<1x128xf32>
    %38 = arith.mulf %37, %27 : vector<1x128xf32>
    %c0_23 = arith.constant 0 : index
    %c0_24 = arith.constant 0 : index
    %39 = vector.load %arg11[%c0_23, %c0_24] : memref<1x128xf32, #tpu.memory_space<vmem>>, vector<1x128xf32>
    tpu.vector_store %arg11[%c0_23, %c0_24], %38 {strides = array<i32>} : memref<1x128xf32, #tpu.memory_space<vmem>>, vector<1x128xf32>,
    %cst_25 = arith.constant 1.000000e+00 : f32
    %40 = vector.broadcast %cst_25 : f32 to vector<1x128xf32>
    %41 = arith.addf %40, %31 : vector<1x128xf32>
    %cst_26 = arith.constant 1.000000e+00 : f32
    %42 = vector.broadcast %cst_26 : f32 to vector<1x128xf32>
    %43 = arith.divf %42, %41 : vector<1x128xf32>
    %cst_27 = arith.constant 0.000000e+00 : f32
    %44 = vector.broadcast %cst_27 : f32 to vector<1x128xf32>
    %45 = arith.cmpf oge, %25, %44 : vector<1x128xf32>
    %46 = arith.mulf %31, %43 : vector<1x128xf32>
    %47 = arith.select %45, %43, %46 : vector<1x128xi1>, vector<1x128xf32>
    %c0_28 = arith.constant 0 : index
    %c0_29 = arith.constant 0 : index
    %48 = vector.load %arg10[%c0_28, %c0_29] : memref<1x128xf32, #tpu.memory_space<vmem>>, vector<1x128xf32>
    tpu.vector_store %arg10[%c0_28, %c0_29], %47 {strides = array<i32>} : memref<1x128xf32, #tpu.memory_space<vmem>>, vector<1x128xf32>,
    return
  }
  func.func @transform_0(%arg0: i32) -> (i32, i32) {
    %c0_i32 = arith.constant 0 : i32
    %c0_i32_0 = arith.constant 0 : i32
    return %c0_i32, %arg0 : i32, i32
  }
  func.func @transform_1(%arg0: i32) -> (i32, i32) {
    %c0_i32 = arith.constant 0 : i32
    %c0_i32_0 = arith.constant 0 : i32
    return %c0_i32, %arg0 : i32, i32
  }
  func.func @transform_2(%arg0: i32) -> (i32, i32) {
    %c0_i32 = arith.constant 0 : i32
    %c0_i32_0 = arith.constant 0 : i32
    return %c0_i32, %arg0 : i32, i32
  }
  func.func @transform_3(%arg0: i32) -> (i32, i32) {
    %c0_i32 = arith.constant 0 : i32
    %c0_i32_0 = arith.constant 0 : i32
    %c0_i32_1 = arith.constant 0 : i32
    return %c0_i32, %c0_i32_0 : i32, i32
  }
  func.func @transform_4(%arg0: i32) -> (i32, i32) {
    %c0_i32 = arith.constant 0 : i32
    %c0_i32_0 = arith.constant 0 : i32
    %c0_i32_1 = arith.constant 0 : i32
    return %c0_i32, %c0_i32_0 : i32, i32
  }
  func.func @transform_5(%arg0: i32) -> (i32, i32) {
    %c0_i32 = arith.constant 0 : i32
    %c0_i32_0 = arith.constant 0 : i32
    %c0_i32_1 = arith.constant 0 : i32
    return %c0_i32, %c0_i32_0 : i32, i32
  }
  func.func @transform_6(%arg0: i32) -> (i32, i32) {
    %c0_i32 = arith.constant 0 : i32
    %c0_i32_0 = arith.constant 0 : i32
    %c0_i32_1 = arith.constant 0 : i32
    return %c0_i32, %c0_i32_0 : i32, i32
  }
  func.func @transform_7(%arg0: i32) -> (i32, i32) {
    %c0_i32 = arith.constant 0 : i32
    %c0_i32_0 = arith.constant 0 : i32
    %c0_i32_1 = arith.constant 0 : i32
    return %c0_i32, %c0_i32_0 : i32, i32
  }
  func.func @transform_8(%arg0: i32) -> (i32, i32) {
    %c0_i32 = arith.constant 0 : i32
    %c0_i32_0 = arith.constant 0 : i32
    %c0_i32_1 = arith.constant 0 : i32
    return %c0_i32, %c0_i32_0 : i32, i32
  }
  func.func @transform_9(%arg0: i32) -> (i32, i32) {
    %c0_i32 = arith.constant 0 : i32
    %c0_i32_0 = arith.constant 0 : i32
    return %c0_i32, %arg0 : i32, i32
  }
  func.func @transform_10(%arg0: i32) -> (i32, i32) {
    %c0_i32 = arith.constant 0 : i32
    %c0_i32_0 = arith.constant 0 : i32
    return %c0_i32, %arg0 : i32, i32
  }
}

</mosaic_0001>

<bundles_post_ra>
// kernel: tpu_custom_call.1
= control target key start
LH: loop header
LB: loop body
LE: loop exit
PB: predicated region body
PF: predicated region fallthrough
CT: control target
= control target key end

     0   :  { %s2279_s0 = inlined_call_operand.vmem [shape: bf16[128,256], index: 0, kind: input, shape index: {}]   ;;  %s2280_s1 = inlined_call_operand.vmem [shape: f32[1,256], index: 1, kind: input, shape index: {}]   ;;  %s2281_s2 = inlined_call_operand.vmem [shape: f32[1,256], index: 2, kind: input, shape index: {}]   ;;  %s2282_s3 = inlined_call_operand.vmem [shape: bf16[128,128], index: 3, kind: input, shape index: {}]   ;;  %s2283_s4 = inlined_call_operand.vmem [shape: f32[128,1], index: 4, kind: input, shape index: {}]   ;;  %s2284_s5 = inlined_call_operand.vmem [shape: bf16[128,128], index: 5, kind: input, shape index: {}]   ;;  %s2285_s6 = inlined_call_operand.vmem [shape: f32[128,1], index: 6, kind: input, shape index: {}]   ;;  %s2286_s7 = inlined_call_operand.vmem [shape: f32[128,1], index: 7, kind: input, shape index: {}]   ;;  %s2287_s8 = inlined_call_operand.<no memory space> [shape: f32[1,1], index: 8, kind: input, shape index: {}]   ;;  %s2288_s9 = inlined_call_operand.hbm [shape: f32[1,256], index: 9, kind: output, shape index: {0}]   ;;  %s2289_s10 = inlined_call_operand.hbm [shape: f32[1,256], index: 10, kind: output, shape index: {1}]  }
   0x1   :  { %2292 = sst [smem:[#allocation10_spill]] %s2279_s0 }
   0x2   :  { %16 = sst [smem:[#allocation2]] %s2287_s8 }
   0x3   :  { %17 = vsyncpa [#allocation5], 0 }
   0x4   :  { %19 = vsyncpa [#allocation5 + $0x1], 0 }
   0x5   :  { %20 = vsyncpa [#allocation7], 0 }
   0x6   :  { %22 = vsyncpa [#allocation7 + $0x1], 0  ;;  %s1822_s15 = smov 0   ;;  %s1824_s16 = smov 0  }
   0x7   :  { %s1826_s17 = smov 0   ;;  %s1828_s18 = smov 0  }
   0x8 LB: > { %s1843_s8 = sadd.s32 4294967295, %s1759_s18   ;;  %s1449_s19 = sadd.s32 4294967294, %s1759_s18   ;;  %s1759_s18 = sphi %s1828_s18, %s2303_s18   ;;  %s1755_s17 = sphi %s1826_s17, %s2302_s17   ;;  %s1751_s16 = sphi %s1824_s16, %s2301_s16   ;;  %s1747_s15 = sphi %s1822_s15, %s2300_s15  }
   0x9   : > { %s1847_s20 = sadd.s32 1, %s1759_s18   ;;  %s35_s21 = sadd.s32 1, %s1755_s17 }
   0xa   : > { %s32_s22 = ssub.s32 %s1759_s18, %s1847_s20  ;;  %p42_p0 = scmp.ne.s32.totalorder %s1755_s17, %s1751_s16 }
   0xb   : > { %p33_p1 = scmp.eq.s32.totalorder %s32_s22, 0  ;;  %p43_p2 = scmp.eq.s32.totalorder %s1759_s18, 0 }
   0xc   : > { %p250_p3 = scmp.eq.s32.totalorder %s1843_s8, 1  ;;  %p255_p4 = scmp.ne.s32.totalorder %s1751_s16, %s1747_s15 }
   0xd   : > { %s1859_s23 = scalar_select %p33_p1, %s1755_s17, %s35_s21  }
   0xe   : > { %p44_p5 = por %p43_p2, %p42_p0  ;;  %p1861_p6 = por %p250_p3, %p42_p0 }
   0xf   : > { %p256_p7 = scmp.eq.s32.totalorder %s1449_s19, 1  ;;  %p1451_p9 = scmp.ge.s32.totalorder %s1759_s18, 2 }
  0x11   : > { %p1865_p8 = por %p256_p7, %p255_p4  ;;  %316 = sbr.rel (%p1451_p9) target bundleno = 44 (0x2c), region = 40 }
  0x18   : > { %319 = sbr.rel (!%p44_p5) target bundleno = 44 (0x2c), region = 44  ;;  %s321_s26 = sand.u32 (%p44_p5), 1, %s1755_s17  }
  0x19   : > { %s1453_s27 = sshll.u32 (%p44_p5), %s1759_s18, 2  ;;  %s1452_s28 = sshll.u32 (%p44_p5), %s321_s26, 6 }
  0x1a   : > { %s2295_s0 = sld [smem:[#allocation10_spill]] (%p44_p5)  ;;  %s323_s12 = scalar_lea.vmem (%p44_p5), [#allocation3], %s1452_s28 }
  0x20   : > { %s1877_s11 = scalar_lea.vmem %s2295_s0, %s1453_s27 }
  0x21   : > { %v341_v0 = vld [vmem:[%s1877_s11] sm:$0xf]  ;;  %v343_v1 = vld [vmem:[%s1877_s11 + $0x8] sm:$0xf]  ;;  %v345_v2 = vld [vmem:[%s1877_s11 + $0x10] sm:$0xf] }
  0x22   : > { %342 = vst [vmem:[%s323_s12] sm:$0xf] %v341_v0  ;;  %344 = vst [vmem:[%s323_s12 + $0x4] sm:$0xf] %v343_v1  ;;  %v347_v3 = vld [vmem:[%s1877_s11 + $0x18] sm:$0xf] }
  0x23   : > { %v349_v4 = vld [vmem:[%s1877_s11 + $0x20] sm:$0xf]  ;;  %346 = vst [vmem:[%s323_s12 + $0x8] sm:$0xf] %v345_v2  ;;  %348 = vst [vmem:[%s323_s12 + $0xc] sm:$0xf] %v347_v3 }
  0x24   : > { %350 = vst [vmem:[%s323_s12 + $0x10] sm:$0xf] %v349_v4  ;;  %v351_v5 = vld [vmem:[%s1877_s11 + $0x28] sm:$0xf]  ;;  %v353_v6 = vld [vmem:[%s1877_s11 + $0x30] sm:$0xf] }
  0x25   : > { %v355_v7 = vld [vmem:[%s1877_s11 + $0x38] sm:$0xf]  ;;  %352 = vst [vmem:[%s323_s12 + $0x14] sm:$0xf] %v351_v5  ;;  %354 = vst [vmem:[%s323_s12 + $0x18] sm:$0xf] %v353_v6 }
  0x26   : > { %356 = vst [vmem:[%s323_s12 + $0x1c] sm:$0xf] %v355_v7  ;;  %v357_v8 = vld [vmem:[%s1877_s11 + $0x40] sm:$0xf]  ;;  %v359_v9 = vld [vmem:[%s1877_s11 + $0x48] sm:$0xf] }
  0x27   : > { %v361_v10 = vld [vmem:[%s1877_s11 + $0x50] sm:$0xf]  ;;  %358 = vst [vmem:[%s323_s12 + $0x20] sm:$0xf] %v357_v8  ;;  %360 = vst [vmem:[%s323_s12 + $0x24] sm:$0xf] %v359_v9 }
  0x28   : > { %362 = vst [vmem:[%s323_s12 + $0x28] sm:$0xf] %v361_v10  ;;  %v363_v11 = vld [vmem:[%s1877_s11 + $0x58] sm:$0xf]  ;;  %v365_v12 = vld [vmem:[%s1877_s11 + $0x60] sm:$0xf] }
  0x29   : > { %v367_v13 = vld [vmem:[%s1877_s11 + $0x68] sm:$0xf]  ;;  %364 = vst [vmem:[%s323_s12 + $0x2c] sm:$0xf] %v363_v11  ;;  %366 = vst [vmem:[%s323_s12 + $0x30] sm:$0xf] %v365_v12 }
  0x2a   : > { %368 = vst [vmem:[%s323_s12 + $0x34] sm:$0xf] %v367_v13  ;;  %v369_v14 = vld [vmem:[%s1877_s11 + $0x70] sm:$0xf]  ;;  %v371_v15 = vld [vmem:[%s1877_s11 + $0x78] sm:$0xf] }
  0x2b   : > { %370 = vst [vmem:[%s323_s12 + $0x38] sm:$0xf] %v369_v14  ;;  %372 = vst [vmem:[%s323_s12 + $0x3c] sm:$0xf] %v371_v15 }
  0x2c PF: > { %p1454_p10 = scmp.ge.s32.totalorder %s1759_s18, 1  ;;  %p438_p11 = scmp.lt.s32.totalorder %s1759_s18, 3 }
  0x2e   : > { %p439_p12 = pnand %p1454_p10, %p438_p11 }
  0x2f   : > { %s1898_s13 = sand.u32 (!%p439_p12), 1, %s1751_s16   ;;  %v546_v16 = vld [vmem:[%s2283_s4] sm:$0xff] (!%p439_p12)  ;;  %v548_v17 = vld [vmem:[%s2283_s4 + $0x10] sm:$0xff] (!%p439_p12)  ;;  %v1761_v18 = vmov (!%p439_p12), 0   ;;  %v547_v22 = vld [vmem:[%s2283_s4 + $0x8] sm:$0xff] (!%p439_p12)  ;;  %s1281_s14 = sld [smem:[#allocation2]] (!%p439_p12) }
  0x30   : > { %442 = sbr.rel (%p439_p12) target bundleno = 674 (0x2a2), region = 93  ;;  %s1455_s26 = sshll.u32 (!%p439_p12), %s1898_s13, 6  ;;  %1625 = vset.pattern.permute.xlu0 (!%p439_p12), %v1761_v18  ;;  %1626 = vset.pattern.permute.xlu1 (!%p439_p12), %v1761_v18  ;;  %v1635_v19 = vld [vmem:[%s2282_s3] sm:$0xff] (!%p439_p12)   ;;  %v549_v23 = vld [vmem:[%s2283_s4 + $0x18] sm:$0xff] (!%p439_p12)  ;;  %v551_v26 = vld [vmem:[%s2283_s4 + $0x28] sm:$0xff] (!%p439_p12) }
  0x31   : > { %564 = vperm.xlu0 (!%p439_p12), %1625, %v546_v16   ;;  %574 = vperm.xlu1 (!%p439_p12), %1626, %v548_v17   ;;  %s1910_s29 = scalar_lea.vmem (!%p439_p12), [#allocation3], %s1455_s26  ;;  %v550_v25 = vld [vmem:[%s2283_s4 + $0x20] sm:$0xff] (!%p439_p12)  ;;  %v552_v28 = vld [vmem:[%s2283_s4 + $0x30] sm:$0xff] (!%p439_p12)  ;;  %v553_v29 = vld [vmem:[%s2283_s4 + $0x38] sm:$0xff] (!%p439_p12)  ;;  %p491_p13 = scmp.lt.s32.totalorder (!%p439_p12), %s1843_s8, 1 }
  0x32   : > { %v1913_v20 = vld [vmem:[%s1910_s29] sm:$0xff] (!%p439_p12)   ;;  %v1916_v21 = vld [vmem:[%s1910_s29 + $0x8] sm:$0xff] (!%p439_p12)   ;;  %1532 = vmatprep.mubr.bf16.mxu0 (!%p439_p12), %v1635_v19  ;;  %v1925_v24 = vld [vmem:[%s1910_s29 + $0x10] sm:$0xff] (!%p439_p12)   ;;  %s2290_s27 = sshll.u32 (!%p439_p12), %s1843_s8, 4  ;;  %s484_s28 = scalar_lea.vmem (!%p439_p12), [#allocation4], %s1898_s13 }
  0x33   : > { %1516 = vmatprep.subr.bf16.mxu0 (!%p439_p12), %v1913_v20  ;;  %v1937_v27 = vld [vmem:[%s1910_s29 + $0x18] sm:$0xff] (!%p439_p12)   ;;  %v1948_v30 = vld [vmem:[%s1910_s29 + $0x20] sm:$0xff] (!%p439_p12)   ;;  %v555_v32 = vld [vmem:[%s2283_s4 + $0x48] sm:$0xff] (!%p439_p12)  ;;  %s2190_s22 = scalar_lea.hbm (!%p439_p12), %s2288_s9, %s2290_s27  ;;  %s1313_s30 = scalar_lea.sflag (!%p439_p12), [#allocation5], %s1898_s13 }
  0x34   : > { %1517 = vmatpush3.bf16.msra.mxu0 (!%p439_p12), %v1913_v20  ;;  %v554_v31 = vld [vmem:[%s2283_s4 + $0x40] sm:$0xff] (!%p439_p12)  ;;  %v1959_v33 = vld [vmem:[%s1910_s29 + $0x28] sm:$0xff] (!%p439_p12)   ;;  %v556_v34 = vld [vmem:[%s2283_s4 + $0x50] sm:$0xff] (!%p439_p12) }
  0x35   : > { %569 = vperm.xlu0 (!%p439_p12), %1625, %v547_v22   ;;  %579 = vperm.xlu1 (!%p439_p12), %1626, %v549_v23   ;;  %v557_v35 = vld [vmem:[%s2283_s4 + $0x58] sm:$0xff] (!%p439_p12)  ;;  %v1970_v36 = vld [vmem:[%s1910_s29 + $0x30] sm:$0xff] (!%p439_p12)   ;;  %v558_v37 = vld [vmem:[%s2283_s4 + $0x60] sm:$0xff] (!%p439_p12) }
  0x36   : > { %1518 = vmatprep.subr.bf16.mxu0 (!%p439_p12), %v1916_v21  ;;  %v559_v38 = vld [vmem:[%s2283_s4 + $0x68] sm:$0xff] (!%p439_p12)  ;;  %v1981_v39 = vld [vmem:[%s1910_s29 + $0x38] sm:$0xff] (!%p439_p12)   ;;  %v560_v40 = vld [vmem:[%s2283_s4 + $0x70] sm:$0xff] (!%p439_p12)  ;;  %s1329_s29 = sshll.u32 (!%p439_p12), %s484_s28, 4  ;;  %s2192_s29 = int_to_ptr.vmem [resolvable:$true] %s1329_s29 }
  0x37   : > { %v561_v41 = vld [vmem:[%s2283_s4 + $0x78] sm:$0xff]  ;;  %v875_v42 = vld [vmem:[%s2285_s6] sm:$0xff]  ;;  %v876_v43 = vld [vmem:[%s2285_s6 + $0x8] sm:$0xff]  ;;  %s492_s19 = scalar_select %p491_p13, %s1843_s8, 1 }
  0x38   : > { %1519 = vmatpush3.bf16.msra.mxu0 %v1916_v21  ;;  %v1636_v44 = vld [vmem:[%s2282_s3 + $0x8] sm:$0xff]   ;;  %v1637_v45 = vld [vmem:[%s2282_s3 + $0x10] sm:$0xff]   ;;  %v878_v47 = vld [vmem:[%s2285_s6 + $0x18] sm:$0xff]  ;;  %s1665_s11 = scalar_lea.vmem %s2192_s29, 16 }
  0x39   : > { %584 = vperm.xlu0 %1625, %v550_v25   ;;  %589 = vperm.xlu1 %1626, %v551_v26   ;;  %v877_v46 = vld [vmem:[%s2285_s6 + $0x10] sm:$0xff]  ;;  %v879_v48 = vld [vmem:[%s2285_s6 + $0x20] sm:$0xff]  ;;  %v1638_v50 = vld [vmem:[%s2282_s3 + $0x18] sm:$0xff]   ;;  %s493_s26 = scalar_lea.vmem %s2280_s1, %s492_s19  ;;  %s496_s12 = scalar_lea.vmem %s2281_s2, %s492_s19 }
  0x3a   : > { %1520 = vmatprep.subr.bf16.mxu0 %v1925_v24  ;;  %v1148_v49 = vld [vmem:[%s2286_s7] sm:$0xff]  ;;  %v1149_v52 = vld [vmem:[%s2286_s7 + $0x8] sm:$0xff]  ;;  %v1150_v54 = vld [vmem:[%s2286_s7 + $0x10] sm:$0xff]  ;;  %s2291_s19 = scalar_lea.vmem [#allocation6], %s1898_s13  ;;  %p1666_p0 = scmp.ne.s32.totalorder %s2192_s29, %s1665_s11 }
  0x3b   : > { %v1639_v51 = vld [vmem:[%s2282_s3 + $0x20] sm:$0xff]   ;;  %v880_v53 = vld [vmem:[%s2285_s6 + $0x28] sm:$0xff]  ;;  %v881_v55 = vld [vmem:[%s2285_s6 + $0x30] sm:$0xff] }
  0x3c   : > { %1521 = vmatpush3.bf16.msra.mxu0 %v1925_v24  ;;  %v1640_v56 = vld [vmem:[%s2282_s3 + $0x28] sm:$0xff]   ;;  %v1641_v57 = vld [vmem:[%s2282_s3 + $0x30] sm:$0xff]   ;;  %v1151_v58 = vld [vmem:[%s2286_s7 + $0x18] sm:$0xff]  ;;  %p1667_p1 = pnand %p1666_p0, %p1861_p6 }
  0x3d   : > { %594 = vperm.xlu0 %1625, %v552_v28   ;;  %599 = vperm.xlu1 %1626, %v553_v29   ;;  %v882_v59 = vld [vmem:[%s2285_s6 + $0x38] sm:$0xff]  ;;  %v1152_v60 = vld [vmem:[%s2286_s7 + $0x20] sm:$0xff]  ;;  %v1153_v63 = vld [vmem:[%s2286_s7 + $0x28] sm:$0xff] }
  0x3e   : > { %1522 = vmatprep.subr.bf16.mxu0 %v1937_v27  ;;  %v883_v61 = vld [vmem:[%s2285_s6 + $0x40] sm:$0xff]  ;;  %v1642_v62 = vld [vmem:[%s2282_s3 + $0x38] sm:$0xff]   ;;  %v884_v0 = vld [vmem:[%s2285_s6 + $0x48] sm:$0xff]  ;;  %p1668_p2 = pneg %p1667_p1 }
  0x3f   : > { %v1154_v1 = vld [vmem:[%s2286_s7 + $0x30] sm:$0xff]  ;;  %v1155_v3 = vld [vmem:[%s2286_s7 + $0x38] sm:$0xff]  ;;  %v1156_v5 = vld [vmem:[%s2286_s7 + $0x40] sm:$0xff] }
  0x40   : > { %1523 = vmatpush3.bf16.msra.mxu0 %v1937_v27  ;;  %v885_v2 = vld [vmem:[%s2285_s6 + $0x50] sm:$0xff]  ;;  %v886_v4 = vld [vmem:[%s2285_s6 + $0x58] sm:$0xff]  ;;  %v887_v6 = vld [vmem:[%s2285_s6 + $0x60] sm:$0xff] }
  0x41   : > { %604 = vperm.xlu0 %1625, %v554_v31   ;;  %609 = vperm.xlu1 %1626, %v555_v32   ;;  %v1157_v7 = vld [vmem:[%s2286_s7 + $0x48] sm:$0xff]  ;;  %v1158_v9 = vld [vmem:[%s2286_s7 + $0x50] sm:$0xff]  ;;  %v1159_v11 = vld [vmem:[%s2286_s7 + $0x58] sm:$0xff] }
  0x42   : > { %1524 = vmatprep.subr.bf16.mxu0 %v1948_v30  ;;  %v888_v8 = vld [vmem:[%s2285_s6 + $0x68] sm:$0xff]  ;;  %v889_v10 = vld [vmem:[%s2285_s6 + $0x70] sm:$0xff]  ;;  %v890_v12 = vld [vmem:[%s2285_s6 + $0x78] sm:$0xff] }
  0x43   : > { %v1160_v13 = vld [vmem:[%s2286_s7 + $0x60] sm:$0xff]  ;;  %v1161_v14 = vld [vmem:[%s2286_s7 + $0x68] sm:$0xff]  ;;  %v1162_v15 = vld [vmem:[%s2286_s7 + $0x70] sm:$0xff] }
  0x44   : > { %1525 = vmatpush3.bf16.msra.mxu0 %v1948_v30  ;;  %v1163_v16 = vld [vmem:[%s2286_s7 + $0x78] sm:$0xff]  ;;  %v1643_v17 = vld [vmem:[%s2284_s5] sm:$0xff]  }
  0x45   : > { %614 = vperm.xlu0 %1625, %v556_v34   ;;  %619 = vperm.xlu1 %1626, %v557_v35  }
  0x46   : > { %1526 = vmatprep.subr.bf16.mxu0 %v1959_v33  ;;  %1564 = vmatprep.mubr.bf16.mxu1 %v1643_v17 }
  0x48   : > { %1527 = vmatpush3.bf16.msra.mxu0 %v1959_v33 }
  0x49   : > { %624 = vperm.xlu0 %1625, %v558_v37   ;;  %629 = vperm.xlu1 %1626, %v559_v38  }
  0x4a   : > { %1528 = vmatprep.subr.bf16.mxu0 %v1970_v36 }
  0x4c   : > { %1529 = vmatpush3.bf16.msra.mxu0 %v1970_v36 }
  0x4d   : > { %634 = vperm.xlu0 %1625, %v560_v40   ;;  %639 = vperm.xlu1 %1626, %v561_v41  }
  0x4e   : > { %1530 = vmatprep.subr.bf16.mxu0 %v1981_v39 }
  0x50   : > { %1531 = vmatpush3.bf16.msra.mxu0 %v1981_v39 }
  0x51   : > { %893 = vperm.xlu0 %1625, %v875_v42   ;;  %898 = vperm.xlu1 %1626, %v876_v43  }
  0x53   : > { %1533 = vmatmul.mubr.bf16.vlgmr.msra.gmra.mrb[0].mxu0 %v1636_v44 }
  0x54   : > { %1536 = vmatprep.mubr.bf16.mxu0 %v1637_v45 }
  0x55   : > { %903 = vperm.xlu0 %1625, %v877_v46   ;;  %908 = vperm.xlu1 %1626, %v878_v47  }
  0x59   : > { %913 = vperm.xlu0 %1625, %v879_v48   ;;  %1166 = vperm.xlu1 %1626, %v1148_v49  }
  0x5b   : > { %1537 = vmatmul.mubr.bf16.gmra.mrb[4].mxu0 %v1638_v50 }
  0x5c   : > { %1540 = vmatprep.mubr.bf16.mxu0 %v1639_v51 }
  0x5d   : > { %1171 = vperm.xlu0 %1625, %v1149_v52   ;;  %918 = vperm.xlu1 %1626, %v880_v53  }
  0x61   : > { %1176 = vperm.xlu0 %1625, %v1150_v54   ;;  %923 = vperm.xlu1 %1626, %v881_v55  }
  0x63   : > { %1541 = vmatmul.mubr.bf16.gmra.mrb[8].mxu0 %v1640_v56 }
  0x64   : > { %1544 = vmatprep.mubr.bf16.mxu0 %v1641_v57 }
  0x65   : > { %1181 = vperm.xlu0 %1625, %v1151_v58   ;;  %928 = vperm.xlu1 %1626, %v882_v59  }
  0x69   : > { %1186 = vperm.xlu0 %1625, %v1152_v60   ;;  %933 = vperm.xlu1 %1626, %v883_v61  }
  0x6b   : > { %1545 = vmatmul.mubr.bf16.gmra.mrb[12].mxu0 %v1642_v62 }
  0x6d   : > { %1191 = vperm.xlu0 %1625, %v1153_v63   ;;  %938 = vperm.xlu1 %1626, %v884_v0  }
  0x71   : > { %1196 = vperm.xlu0 %1625, %v1154_v1   ;;  %943 = vperm.xlu1 %1626, %v885_v2  }
  0x75   : > { %1201 = vperm.xlu0 %1625, %v1155_v3   ;;  %948 = vperm.xlu1 %1626, %v886_v4  }
  0x79   : > { %1206 = vperm.xlu0 %1625, %v1156_v5   ;;  %953 = vperm.xlu1 %1626, %v887_v6  }
  0x7d   : > { %1211 = vperm.xlu0 %1625, %v1157_v7   ;;  %958 = vperm.xlu1 %1626, %v888_v8  }
  0x81   : > { %1216 = vperm.xlu0 %1625, %v1158_v9   ;;  %963 = vperm.xlu1 %1626, %v889_v10  }
  0x85   : > { %1221 = vperm.xlu0 %1625, %v1159_v11   ;;  %968 = vperm.xlu1 %1626, %v890_v12  }
  0x89   : > { %1226 = vperm.xlu0 %1625, %v1160_v13   ;;  %1231 = vperm.xlu1 %1626, %v1161_v14  }
  0x8d   : > { %1236 = vperm.xlu0 %1625, %v1162_v15   ;;  %1241 = vperm.xlu1 %1626, %v1163_v16  }
  0xb0   : > { %v565_v18 = vpop.permute.xlu0 %564  ;;  %v575_v19 = vpop.permute.xlu1 %574 }
  0xb4   : > { %v570_v22 = vpop.permute.xlu0 %569  ;;  %v580_v23 = vpop.permute.xlu1 %579 }
  0xb8   : > { %v585_v25 = vpop.permute.xlu0 %584  ;;  %v590_v26 = vpop.permute.xlu1 %589 }
  0xbc   : > { %v595_v28 = vpop.permute.xlu0 %594  ;;  %v600_v34 = vpop.permute.xlu1 %599 }
  0xc0   : > { %v605_v44 = vpop.permute.xlu0 %604  ;;  %v610_v48 = vpop.permute.xlu1 %609 }
  0xc4   : > { %v615_v57 = vpop.permute.xlu0 %614  ;;  %v620_v61 = vpop.permute.xlu1 %619 }
  0xc8   : > { %v625_v5 = vpop.permute.xlu0 %624  ;;  %v630_v10 = vpop.permute.xlu1 %629 }
  0xcc   : > { %v635_v17 = vpop.permute.xlu0 %634 }
 0x126   : > { %v1534_v29 = vpop.f32.mrb[0].mxu0 }
 0x127   : > { %v781_v31 = vadd.f32 %v1534_v29, %v575_v19  ;;  %v772_v32 = vpop.f32.mrb[1].mxu0 }
 0x128   : > { %v773_v35 = vadd.f32 %v772_v32, %v565_v18  ;;  %v1535_v37 = vpop.f32.mrb[2].mxu0 }
 0x129   : > { %v784_v38 = vadd.f32 %v1535_v37, %v580_v23  ;;  %v775_v40 = vpop.f32.mrb[3].mxu0  ;;  %v837_v42 = vmax.f32 %v781_v31, 0.0 }
 0x12a   : > { %v776_v41 = vadd.f32 %v775_v40, %v570_v22  ;;  %v835_v45 = vmax.f32 %v773_v35, 0.0 }
 0x12b   : > { %v838_v43 = vmax.f32 %v784_v38, 0.0 }
 0x12c   : > { %v836_v46 = vmax.f32 %v776_v41, 0.0 }
 0x12d   : > { %v868_v47 = vpack.c.bf16 %v838_v43, %v837_v42  ;;  %v1644_v42 = vld [vmem:[%s2284_s5 + $0x8] sm:$0xff]   ;;  %v1645_v43 = vld [vmem:[%s2284_s5 + $0x10] sm:$0xff]  }
 0x12e   : > { %v1538_v49 = vpop.f32.mrb[4].mxu0  ;;  %v867_v50 = vpack.c.bf16 %v836_v46, %v835_v45  ;;  %v1647_v45 = vld [vmem:[%s2284_s5 + $0x20] sm:$0xff]   ;;  %v1648_v46 = vld [vmem:[%s2284_s5 + $0x28] sm:$0xff]  }
 0x12f   : > { %v797_v51 = vadd.f32 %v1538_v49, %v595_v28  ;;  %v788_v52 = vpop.f32.mrb[5].mxu0  ;;  %v894_v49 = vpop.permute.xlu0 %893 }
 0x130   : > { %v789_v53 = vadd.f32 %v788_v52, %v585_v25  ;;  %v1539_v54 = vpop.f32.mrb[6].mxu0  ;;  %1548 = vmatprep.subr.bf16.mxu1 %v867_v50  ;;  %v640_v25 = vpop.permute.xlu1 %639 }
 0x131   : > { %v800_v55 = vadd.f32 %v1539_v54, %v600_v34  ;;  %v791_v56 = vpop.f32.mrb[7].mxu0  ;;  %1549 = vmatpush3.bf16.msra.mxu1 %v867_v50  ;;  %v841_v59 = vmax.f32 %v797_v51, 0.0 }
 0x132   : > { %v792_v58 = vadd.f32 %v791_v56, %v590_v26  ;;  %1550 = vmatprep.subr.bf16.mxu1 %v868_v47  ;;  %v839_v62 = vmax.f32 %v789_v53, 0.0 }
 0x133   : > { %v842_v60 = vmax.f32 %v800_v55, 0.0  ;;  %v904_v51 = vpop.permute.xlu0 %903 }
 0x134   : > { %v840_v63 = vmax.f32 %v792_v58, 0.0  ;;  %v899_v50 = vpop.permute.xlu1 %898 }
 0x135   : > { %v870_v0 = vpack.c.bf16 %v842_v60, %v841_v59  ;;  %1551 = vmatpush3.bf16.msra.mxu1 %v868_v47  ;;  %v1649_v47 = vld [vmem:[%s2284_s5 + $0x30] sm:$0xff]  }
 0x136   : > { %v869_v1 = vpack.c.bf16 %v840_v63, %v839_v62  ;;  %v1542_v2 = vpop.f32.mrb[8].mxu0 }
 0x137   : > { %v813_v3 = vadd.f32 %v1542_v2, %v615_v57  ;;  %v804_v4 = vpop.f32.mrb[9].mxu0  ;;  %v914_v53 = vpop.permute.xlu0 %913 }
 0x138   : > { %v805_v6 = vadd.f32 %v804_v4, %v605_v44  ;;  %v1543_v7 = vpop.f32.mrb[10].mxu0  ;;  %1552 = vmatprep.subr.bf16.mxu1 %v869_v1  ;;  %v1646_v44 = vld [vmem:[%s2284_s5 + $0x18] sm:$0xff]   ;;  %v909_v52 = vpop.permute.xlu1 %908 }
 0x139   : > { %v816_v8 = vadd.f32 %v1543_v7, %v620_v61  ;;  %v807_v9 = vpop.f32.mrb[11].mxu0  ;;  %1553 = vmatpush3.bf16.msra.mxu1 %v869_v1  ;;  %v845_v12 = vmax.f32 %v813_v3, 0.0 }
 0x13a   : > { %v808_v11 = vadd.f32 %v807_v9, %v610_v48  ;;  %1554 = vmatprep.subr.bf16.mxu1 %v870_v0  ;;  %v843_v14 = vmax.f32 %v805_v6, 0.0  ;;  %v1650_v48 = vld [vmem:[%s2284_s5 + $0x38] sm:$0xff]  }
 0x13b   : > { %v846_v13 = vmax.f32 %v816_v8, 0.0  ;;  %v1172_v55 = vpop.permute.xlu0 %1171  ;;  %v514_v8 = vunpack.c.l.bf16 %v1913_v20 }
 0x13c   : > { %v844_v15 = vmax.f32 %v808_v11, 0.0  ;;  %v1167_v54 = vpop.permute.xlu1 %1166  ;;  %v516_v11 = vunpack.c.l.bf16 %v1916_v21 }
 0x13d   : > { %v872_v16 = vpack.c.bf16 %v846_v13, %v845_v12  ;;  %1555 = vmatpush3.bf16.msra.mxu1 %v870_v0 }
 0x13e   : > { %v871_v18 = vpack.c.bf16 %v844_v15, %v843_v14  ;;  %v1546_v19 = vpop.f32.mrb[12].mxu0  ;;  %v515_v15 = vunpack.c.h.bf16 %v1913_v20  ;;  %v518_v20 = vunpack.c.l.bf16 %v1925_v24 }
 0x13f   : > { %v829_v22 = vadd.f32 %v1546_v19, %v635_v17  ;;  %v820_v23 = vpop.f32.mrb[13].mxu0  ;;  %v1177_v57 = vpop.permute.xlu0 %1176  ;;  %v517_v19 = vunpack.c.h.bf16 %v1916_v21  ;;  %v520_v21 = vunpack.c.l.bf16 %v1937_v27 }
 0x140   : > { %v821_v26 = vadd.f32 %v820_v23, %v625_v5  ;;  %v1547_v28 = vpop.f32.mrb[14].mxu0  ;;  %1556 = vmatprep.subr.bf16.mxu1 %v871_v18  ;;  %v919_v56 = vpop.permute.xlu1 %918 }
 0x141   : > { %v832_v29 = vadd.f32 %v1547_v28, %v640_v25  ;;  %v823_v31 = vpop.f32.mrb[15].mxu0  ;;  %1557 = vmatpush3.bf16.msra.mxu1 %v871_v18  ;;  %v849_v34 = vmax.f32 %v829_v22, 0.0 }
 0x142   : > { %v824_v32 = vadd.f32 %v823_v31, %v630_v10  ;;  %1558 = vmatprep.subr.bf16.mxu1 %v872_v16  ;;  %v847_v37 = vmax.f32 %v821_v26, 0.0 }
 0x143   : > { %v850_v35 = vmax.f32 %v832_v29, 0.0  ;;  %v1182_v59 = vpop.permute.xlu0 %1181 }
 0x144   : > { %v848_v38 = vmax.f32 %v824_v32, 0.0  ;;  %v924_v58 = vpop.permute.xlu1 %923 }
 0x145   : > { %v874_v40 = vpack.c.bf16 %v850_v35, %v849_v34  ;;  %1559 = vmatpush3.bf16.msra.mxu1 %v872_v16 }
 0x146   : > { %v873_v41 = vpack.c.bf16 %v848_v38, %v847_v37 }
 0x147   : > { %v1187_v61 = vpop.permute.xlu0 %1186 }
 0x148   : > { %1560 = vmatprep.subr.bf16.mxu1 %v873_v41  ;;  %v929_v60 = vpop.permute.xlu1 %928 }
 0x149   : > { %1561 = vmatpush3.bf16.msra.mxu1 %v873_v41 }
 0x14a   : > { %1562 = vmatprep.subr.bf16.mxu1 %v874_v40 }
 0x14b   : > { %v2137_v63 = vpop.permute.xlu0 %1191 }
 0x14c   : > { %v2135_v62 = vpop.permute.xlu1 %933 }
 0x14d   : > { %1563 = vmatpush3.bf16.msra.mxu1 %v874_v40 }
 0x14f   : > { %v2141_v1 = vpop.permute.xlu0 %1196 }
 0x150   : > { %1565 = vmatmul.mubr.bf16.vlgmr.msra.gmra.mrb[0].mxu1 %v1644_v42  ;;  %v2139_v0 = vpop.permute.xlu1 %938 }
 0x151   : > { %1568 = vmatprep.mubr.bf16.mxu1 %v1645_v43 }
 0x153   : > { %v2143_v3 = vpop.permute.xlu0 %1201 }
 0x154   : > { %v944_v2 = vpop.permute.xlu1 %943 }
 0x157   : > { %v2150_v18 = vpop.permute.xlu0 %1206 }
 0x158   : > { %1569 = vmatmul.mubr.bf16.gmra.mrb[4].mxu1 %v1646_v44  ;;  %v2145_v5 = vpop.permute.xlu1 %948 }
 0x159   : > { %1572 = vmatprep.mubr.bf16.mxu1 %v1647_v45  ;;  %v519_v45 = vunpack.c.h.bf16 %v1925_v24 }
 0x15b   : > { %v1212_v42 = vpop.permute.xlu0 %1211 }
 0x15c   : > { %v2153_v26 = vpop.permute.xlu1 %953 }
 0x160   : > { %1573 = vmatmul.mubr.bf16.gmra.mrb[8].mxu1 %v1648_v46 }
 0x161   : > { %1576 = vmatprep.mubr.bf16.mxu1 %v1649_v47 }
 0x168   : > { %1577 = vmatmul.mubr.bf16.gmra.mrb[12].mxu1 %v1650_v48 }
 0x223   : > { %v1566_v4 = vpop.f32.mrb[0].mxu1 }
 0x224   : > { %v1062_v6 = vadd.f32 %v1566_v4, %v904_v51  ;;  %v1053_v7 = vpop.f32.mrb[1].mxu1  ;;  %v959_v51 = vpop.permute.xlu1 %958 }
 0x225   : > { %v1054_v9 = vadd.f32 %v1053_v7, %v894_v49  ;;  %v1567_v10 = vpop.f32.mrb[2].mxu1 }
 0x226   : > { %v1118_v12 = vmax.f32 %v1062_v6, 0.0  ;;  %v1065_v13 = vadd.f32 %v1567_v10, %v909_v52  ;;  %v1056_v14 = vpop.f32.mrb[3].mxu1  ;;  %v522_v10 = vunpack.c.l.bf16 %v1948_v30 }
 0x227   : > { %v1116_v16 = vmax.f32 %v1054_v9, 0.0  ;;  %v1057_v17 = vadd.f32 %v1056_v14, %v899_v50  ;;  %v1217_v9 = vpop.permute.xlu0 %1216 }
 0x228   : > { %v1119_v22 = vmax.f32 %v1065_v13, 0.0  ;;  %v1134_v28 = vadd.f32 %v1118_v12, %v516_v11  ;;  %v964_v14 = vpop.permute.xlu1 %963 }
 0x229   : > { %v1132_v23 = vadd.f32 %v1116_v16, %v514_v8  ;;  %v1117_v25 = vmax.f32 %v1057_v17, 0.0  ;;  %v523_v17 = vunpack.c.h.bf16 %v1948_v30 }
 0x22a   : > { %v1135_v32 = vadd.f32 %v1119_v22, %v517_v19  ;;  %v1246_v43 = vmul.f32 %v1177_v57, %v1134_v28 }
 0x22b   : > { %v1133_v29 = vadd.f32 %v1117_v25, %v515_v15  ;;  %v1570_v31 = vpop.f32.mrb[4].mxu1  ;;  %v1244_v37 = vmul.f32 %v1167_v54, %v1132_v23  ;;  %v521_v54 = vunpack.c.h.bf16 %v1937_v27  ;;  %v524_v15 = vunpack.c.l.bf16 %v1959_v33 }
 0x22c   : > { %v1078_v34 = vadd.f32 %v1570_v31, %v924_v58  ;;  %v1069_v35 = vpop.f32.mrb[5].mxu1  ;;  %v1247_v52 = vmul.f32 %v1182_v59, %v1135_v32 }
 0x22d   : > { %v1245_v38 = vmul.f32 %v1172_v55, %v1133_v29  ;;  %v1070_v40 = vadd.f32 %v1069_v35, %v914_v53  ;;  %v1571_v41 = vpop.f32.mrb[6].mxu1 }
 0x22e   : > { %v1081_v44 = vadd.f32 %v1571_v41, %v929_v60  ;;  %v1072_v46 = vpop.f32.mrb[7].mxu1  ;;  %v1122_v48 = vmax.f32 %v1078_v34, 0.0  ;;  %v1222_v34 = vpop.permute.xlu0 %1221 }
 0x22f   : > { %v1260_v47 = vadd.f32 %v1245_v38, %v1244_v37  ;;  %v1120_v49 = vmax.f32 %v1070_v40, 0.0  ;;  %v1073_v50 = vadd.f32 %v1072_v46, %v919_v56 }
 0x230   : > { %v1123_v53 = vmax.f32 %v1081_v44, 0.0  ;;  %v1138_v6 = vadd.f32 %v1122_v48, %v520_v21 }
 0x231   : > { %v1261_v55 = vadd.f32 %v1260_v47, %v1246_v43  ;;  %v1136_v58 = vadd.f32 %v1120_v49, %v518_v20  ;;  %v1121_v4 = vmax.f32 %v1073_v50, 0.0 }
 0x232   : > { %v1139_v56 = vadd.f32 %v1123_v53, %v521_v54  ;;  %v1227_v54 = vpop.permute.xlu0 %1226 }
 0x233   : > { %v1248_v57 = vmul.f32 %v1187_v61, %v1136_v58  ;;  %v1262_v7 = vadd.f32 %v1261_v55, %v1247_v52  ;;  %v1137_v8 = vadd.f32 %v1121_v4, %v519_v45  ;;  %v1574_v60 = vpop.f32.mrb[8].mxu1  ;;  %v528_v45 = vunpack.c.l.bf16 %v1981_v39 }
 0x234   : > { %v1094_v24 = vadd.f32 %v1574_v60, %v944_v2  ;;  %v1085_v11 = vpop.f32.mrb[9].mxu1  ;;  %v1250_v2 = vmul.f32 %v2141_v1, %v1138_v6  ;;  %v969_v1 = vpop.permute.xlu1 %968 }
 0x235   : > { %v1263_v12 = vadd.f32 %v1262_v7, %v1248_v57  ;;  %v1249_v59 = vmul.f32 %v2137_v63, %v1137_v8  ;;  %v1086_v27 = vadd.f32 %v1085_v11, %v2135_v62  ;;  %v1575_v13 = vpop.f32.mrb[10].mxu1  ;;  %v525_v63 = vunpack.c.h.bf16 %v1959_v33 }
 0x236   : > { %v1126_v16 = vmax.f32 %v1094_v24, 0.0  ;;  %v1097_v61 = vadd.f32 %v1575_v13, %v2145_v5  ;;  %v1088_v19 = vpop.f32.mrb[11].mxu1  ;;  %v1251_v62 = vmul.f32 %v2143_v3, %v1139_v56  ;;  %v526_v33 = vunpack.c.l.bf16 %v1970_v36 }
 0x237   : > { %v1264_v22 = vadd.f32 %v1263_v12, %v1249_v59  ;;  %v1124_v23 = vmax.f32 %v1086_v27, 0.0  ;;  %v1089_v25 = vadd.f32 %v1088_v19, %v2139_v0 }
 0x238   : > { %v1127_v28 = vmax.f32 %v1097_v61, 0.0  ;;  %v1142_v35 = vadd.f32 %v1126_v16, %v524_v15  ;;  %v1232_v6 = vpop.permute.xlu1 %1231  ;;  %v1282_v61 = vstv %s1281_s14  ;;  %s1762_s14 = smov [#allocation4]  }
 0x239   : > { %v1265_v29 = vadd.f32 %v1264_v22, %v1250_v2  ;;  %v1140_v31 = vadd.f32 %v1124_v23, %v522_v10  ;;  %v1125_v32 = vmax.f32 %v1089_v25, 0.0  ;;  %v1237_v10 = vpop.permute.xlu0 %1236  ;;  %s1669_s21 = sshll.u32 %s1762_s14, 4  ;;  %s1670_s21 = int_to_ptr.vmem [resolvable:$false] %s1669_s21 }
 0x23a   : > { %v1143_v20 = vadd.f32 %v1127_v28, %v525_v63  ;;  %v1254_v44 = vmul.f32 %v1217_v9, %v1142_v35  ;;  %s1671_s27 = scalar_lea.vmem %s1670_s21, 32  ;;  %p1672_p3 = scmp.lt.s32.totalorder %s2192_s29, %s1670_s21 }
 0x23b   : > { %v1252_v5 = vmul.f32 %v2150_v18, %v1140_v31  ;;  %v1266_v30 = vadd.f32 %v1265_v29, %v1251_v62  ;;  %v1141_v37 = vadd.f32 %v1125_v32, %v523_v17  ;;  %v1578_v38 = vpop.f32.mrb[12].mxu1  ;;  %v527_v18 = vunpack.c.h.bf16 %v1970_v36  ;;  %v1284_v62 = vld [vmem:[%s493_s26] sm:$0x1]  ;;  %s2203_s26 = sshll.u32 %s2291_s19, 4  ;;  %p1673_p4 = scmp.lt.s32.totalorder %s1671_s27, %s1665_s11  ;;  %s2235_s26 = int_to_ptr.vmem [resolvable:$true] %s2203_s26 }
 0x23c   : > { %v1110_v40 = vadd.f32 %v1578_v38, %v964_v14  ;;  %v1101_v41 = vpop.f32.mrb[13].mxu1  ;;  %v1255_v55 = vmul.f32 %v1222_v34, %v1143_v20 }
 0x23d   : > { %v1267_v0 = vadd.f32 %v1266_v30, %v1252_v5  ;;  %v1253_v43 = vmul.f32 %v1212_v42, %v1141_v37  ;;  %v1102_v3 = vadd.f32 %v1101_v41, %v2153_v26  ;;  %v1579_v21 = vpop.f32.mrb[14].mxu1  ;;  %v529_v42 = vunpack.c.h.bf16 %v1981_v39  ;;  %v1285_v41 = vld [vmem:[%s496_s12] sm:$0x1]  ;;  %p1674_p5 = por %p1673_p4, %p1672_p3 }
 0x23e   : > { %v1113_v46 = vadd.f32 %v1579_v21, %v969_v1  ;;  %v1104_v47 = vpop.f32.mrb[15].mxu1  ;;  %v1130_v49 = vmax.f32 %v1110_v40, 0.0 }
 0x23f   : > { %v1268_v48 = vadd.f32 %v1267_v0, %v1253_v43  ;;  %v1128_v50 = vmax.f32 %v1102_v3, 0.0  ;;  %v1105_v52 = vadd.f32 %v1104_v47, %v959_v51  ;;  %v1242_v51 = vpop.permute.xlu1 %1241  ;;  %p1675_p7 = pnand %p1674_p5, %p1668_p2 }
 0x240   : > { %v1131_v4 = vmax.f32 %v1113_v46, 0.0  ;;  %v1146_v57 = vadd.f32 %v1130_v49, %v528_v45 }
 0x241   : > { %v1269_v58 = vadd.f32 %v1268_v48, %v1254_v44  ;;  %v1144_v53 = vadd.f32 %v1128_v50, %v526_v33  ;;  %v1129_v26 = vmax.f32 %v1105_v52, 0.0 }
 0x242   : > { %v1147_v36 = vadd.f32 %v1131_v4, %v529_v42  ;;  %v1258_v11 = vmul.f32 %v1237_v10, %v1146_v57 }
 0x243   : > { %v1256_v7 = vmul.f32 %v1227_v54, %v1144_v53  ;;  %v1270_v8 = vadd.f32 %v1269_v58, %v1255_v55  ;;  %v1145_v60 = vadd.f32 %v1129_v26, %v527_v18 }
 0x244   : > { %v1259_v56 = vmul.f32 %v1242_v51, %v1147_v36 }
 0x245   : > { %v1271_v9 = vadd.f32 %v1270_v8, %v1256_v7  ;;  %v1257_v24 = vmul.f32 %v1232_v6, %v1145_v60 }
 0x247   : > { %v1272_v12 = vadd.f32 %v1271_v9, %v1257_v24 }
 0x249   : > { %v1273_v59 = vadd.f32 %v1272_v12, %v1258_v11 }
 0x24b   : > { %v1274_v39 = vadd.f32 %v1273_v59, %v1259_v56 }
 0x24d   : > { %v1275_v27 = vrot.slane %v1274_v39, 4 }
 0x24f   : > { %v1276_v13 = vadd.f32 %v1275_v27, %v1274_v39 }
 0x251   : > { %v1277_v14 = vrot.slane %v1276_v13, 2 }
 0x253   : > { %v1278_v15 = vadd.f32 %v1277_v14, %v1276_v13 }
 0x255   : > { %v1279_v16 = vrot.slane %v1278_v15, 1 }
 0x257   : > { %v1280_v17 = vadd.f32 %v1279_v16, %v1278_v15 }
 0x259   : > { %v1283_v19 = vadd.f32 %v1282_v61, %v1280_v17 }
 0x25b   : > { %v1286_v2 = vand.u32 2147483647, %v1283_v19  ;;  %v1290_v31 = vmax.f32 %v1283_v19, 0.0  ;;  %v1291_v32 = vmul.f32 %v1284_v62, %v1283_v19  ;;  %vm1308_vm0 = vcmp.ge.f32.partialorder %v1283_v19, 0.0 }
 0x25d   : > { %v1287_v22 = vsub.f32 0.0, %v1286_v2  ;;  %v1292_v20 = vsub.f32 %v1290_v31, %v1291_v32 }
 0x25f   : > { %v1288_v23 = vmul.f32 1.442695, %v1287_v22 }
 0x261   : > { %1659 = vpow2.f32 %v1288_v23 }
 0x26b   : > { %v1660_v25 = vpop.eup %1659 }
 0x26c   : > { %v1293_v63 = vadd.f32 1.0, %v1660_v25  ;;  %v1296_v28 = vmul.f32 -0.5, %v1660_v25  ;;  %v1299_v34 = vand.u32 2147483647, %v1660_v25 }
 0x26e   : > { %1661 = vrcp.f32 %v1293_v63  ;;  %v1297_v29 = vadd.f32 1.0, %v1296_v28  ;;  %vm2194_vm1 = vcmp.lt.f32.partialorder %v1299_v34, 0.0004427343 }
 0x26f   : > { %1663 = vlog2.f32 %v1293_v63 }
 0x270   : > { %v1298_v38 = vmul.f32 %v1660_v25, %v1297_v29 }
 0x278   : > { %v1662_v35 = vpop.eup %1661 }
 0x279   : > { %v1664_v5 = vpop.eup %1663  ;;  %v1309_v30 = vmul.f32 %v1662_v35, %v1660_v25 }
 0x27a   : > { %v1295_v37 = vmul.f32 0.6931472, %v1664_v5 }
 0x27b   : > { %v1310_v1 = vsel %vm1308_vm0, %v1662_v35, %v1309_v30 }
 0x27c   : > { %1311 = vst [vmem:[%s484_s28] sm:$0x1] %v1310_v1  ;;  %v1301_v0 = vsel %vm2194_vm1, %v1298_v38, %v1295_v37 }
 0x27d   : > { %1678 = shalt.err (!%p1675_p7)
}
 0x27e   : > { %s1679_s28 = scalar_lea.hbm %s2190_s22, 16  ;;  %s1683_s14 = scalar_lea.hbm %s2288_s9, 32 }
 0x27f   : > { %p1680_p10 = scmp.ne.s32.totalorder %s2190_s22, %s1679_s28  ;;  %p1684_p13 = scmp.lt.u32.totalorder %s2190_s22, %s2288_s9 }
 0x280   : > { %p1685_p0 = scmp.lt.u32.totalorder %s1683_s14, %s1679_s28  ;;  %p1687_p2 = scmp.lt.u32.totalorder %s1679_s28, %s2190_s22 }
 0x281   : > { %p1681_p11 = pnand %p1680_p10, %p1861_p6 }
 0x282   : > { %p1686_p1 = por %p1685_p0, %p1684_p13 }
 0x283   : > { %p1682_p12 = pneg %p1681_p11 }
 0x284   : > { %p1688_p3 = por %p1687_p2, %p1686_p1 }
 0x286   : > { %p1689_p4 = pnand %p1688_p3, %p1682_p12 }
 0x288   : > { %1692 = shalt.err (!%p1689_p4)
}
 0x289   : > { %1580 = dma.vmem_to_hbm [thread:$0]  (%p1861_p6), %s2192_s29, 16, %s2190_s22, %s1313_s30   ;;  %v1302_v43 = vadd.f32 %v1301_v0, %v1292_v20 }
 0x28a   : > { %s2298_s0 = sshll.u32 %s1843_s8, 4  ;;  %s2299_s28 = scalar_lea.vmem [#allocation6], %s1898_s13 }
 0x28b   : > { %v1303_v33 = vmul.f32 %v1302_v43, %v1285_v41  ;;  %s2232_s11 = scalar_lea.hbm %s2289_s10, %s2298_s0  ;;  %s1317_s12 = scalar_lea.sflag [#allocation7], %s1898_s13 }
 0x28c   : > { %s1693_s14 = scalar_lea.vmem %s2235_s26, 16  ;;  %s1763_s29 = smov [#allocation6]  }
 0x28d   : > { %1304 = vst [vmem:[%s2299_s28] sm:$0x1] %v1303_v33  ;;  %p1694_p5 = scmp.ne.s32.totalorder %s2235_s26, %s1693_s14  ;;  %s1697_s8 = sshll.u32 %s1763_s29, 4  ;;  %s1698_s8 = int_to_ptr.vmem [resolvable:$false] %s1697_s8 }
 0x28e   : > { %s1699_s22 = scalar_lea.vmem %s1698_s8, 32  ;;  %p1700_p11 = scmp.lt.s32.totalorder %s2235_s26, %s1698_s8 }
 0x28f   : > { %p1695_p7 = pnand %p1694_p5, %p1861_p6  ;;  %p1701_p12 = scmp.lt.s32.totalorder %s1699_s22, %s1693_s14 }
 0x291   : > { %p1696_p10 = pneg %p1695_p7  ;;  %p1702_p13 = por %p1701_p12, %p1700_p11 }
 0x293   : > { %p1703_p0 = pnand %p1702_p13, %p1696_p10 }
 0x295   : > { %1706 = shalt.err (!%p1703_p0)
}
 0x296   : > { %s1707_s13 = scalar_lea.hbm %s2232_s11, 16  ;;  %s1711_s0 = scalar_lea.hbm %s2289_s10, 32 }
 0x297   : > { %p1708_p1 = scmp.ne.s32.totalorder %s2232_s11, %s1707_s13  ;;  %p1712_p4 = scmp.lt.u32.totalorder %s2232_s11, %s2289_s10 }
 0x298   : > { %p1713_p5 = scmp.lt.u32.totalorder %s1711_s0, %s1707_s13  ;;  %p1715_p10 = scmp.lt.u32.totalorder %s1707_s13, %s2232_s11 }
 0x299   : > { %p1709_p2 = pnand %p1708_p1, %p1861_p6 }
 0x29a   : > { %p1714_p7 = por %p1713_p5, %p1712_p4 }
 0x29b   : > { %p1710_p3 = pneg %p1709_p2 }
 0x29c   : > { %p1716_p11 = por %p1715_p10, %p1714_p7 }
 0x29e   : > { %p1717_p12 = pnand %p1716_p11, %p1710_p3 }
 0x2a0   : > { %1720 = shalt.err (!%p1717_p12)
}
 0x2a1   : > { %1581 = dma.vmem_to_hbm [thread:$0]  (%p1861_p6), %s2235_s26, 16, %s2232_s11, %s1317_s12  }
 0x2a2 PF: > { %s1354_s28 = sand.u32 1, %s1747_s15   ;;  %p1585_p13 = pnand %p1451_p9, %p1865_p8 }
 0x2a3   : > { %s1355_s14 = scalar_lea.sflag [#allocation5], %s1354_s28 }
 0x2a4   : > { %1738 = dma.done.wait (!%p1585_p13), %s1355_s14, 16  }
 0x2a5   : > { %1740 = vsyncadd (!%p1585_p13), %s1355_s14, 4294967280  ;;  %s1363_s29 = scalar_lea.sflag [#allocation7], %s1354_s28 }
 0x2a6   : > { %1742 = dma.done.wait (!%p1585_p13), %s1363_s29, 16  }
 0x2a7   : > { %1744 = vsyncadd (!%p1585_p13), %s1363_s29, 4294967280  ;;  %p25_p6 = scmp.ge.s32.totalorder %s1847_s20, 4   ;;  %s2300_s15 = smov %s1751_s16 }
 0x2a8   : > { %s2301_s16 = smov %s1755_s17  ;;  %s2302_s17 = smov %s1859_s23 }
 0x2a9   : > { %s2303_s18 = smov %s1847_s20  ;;  %27 = sbr.rel (!%p25_p6) target bundleno = 8 (0x8), region = 160 }
 0x2b0   :  { %1367 = vsyncpa [#allocation5], 1 }
 0x2b1   :  { %1369 = vsyncpa [#allocation5 + $0x1], 1 }
 0x2b2   :  { %1370 = vsyncpa [#allocation7], 1 }
 0x2b3   :  { %1372 = vsyncpa [#allocation7 + $0x1], 1 }

</bundles_post_ra>
